<compile_context>
chip_gen: v7x
topology: tpu7x:2x2x1
jax: 0.10.0
libtpu: 0.0.40
codegen_flags: <defaults>
</compile_context>

<pallas_src>
import jax
import jax.numpy as jnp
from jax.experimental import pallas as pl
from jax.experimental.pallas import tpu as pltpu

B = 2
C_OUT = 22                 # Conv3d out_channels
SPATIAL = 16 * 7 * 7       # 784
F1_IN = C_OUT * SPATIAL    # 17248

# Row layout of the packed tail slab (56 sublanes x 128 lanes, f32):
#   rows  0:26, lanes 0:11  -> w3.T  (26, 11)
#   rows 26:37, lanes 0:10  -> w4.T  (11, 10)
#   rows 37:47, lanes 0:10  -> w5.T  (10, 10)
#   row  47,    lanes 0:26  -> b2    (26,)
#   row  48,    lanes 0:10  -> b4    (10,)
TAIL_ROWS = 56


def _mlp_kernel(x_ref, w12_ref, tail_ref, out_ref):
    x = x_ref[...]                                           # (B, 784) f32

    # Static views into the packed tail slab (tiny, all in VMEM).
    w3t = tail_ref[0:26, 0:11]                               # (26, 11)
    w4t = tail_ref[26:37, 0:10]                              # (11, 10)
    w5t = tail_ref[37:47, 0:10]                              # (10, 10)
    b2 = tail_ref[47:48, 0:26]                               # (1, 26)
    b4 = tail_ref[48:49, 0:10]                               # (1, 10)

    # f0 (conv) + f1 + f2 folded into W12; f3: ReLU
    y = jnp.dot(x, w12_ref[...], preferred_element_type=jnp.float32)   # (B, 26)
    y = jnp.maximum(y + b2, 0.0)
    # f4: Linear 26->11 (no bias) ; f5: ReLU
    y = jnp.maximum(jnp.dot(y, w3t, preferred_element_type=jnp.float32), 0.0)
    # f6: Linear 11->10 (bias) ; f7: ReLU
    y = jnp.dot(y, w4t, preferred_element_type=jnp.float32)
    y = jnp.maximum(y + b4, 0.0)
    # f8: Linear 10->10 (no bias)
    y = jnp.dot(y, w5t, preferred_element_type=jnp.float32)

    # f9: LogSoftmax over dim=1
    m = jnp.max(y, axis=1, keepdims=True)
    s = y - m
    lse = jnp.log(jnp.sum(jnp.exp(s), axis=1, keepdims=True))
    out_ref[...] = s - lse


def conv3d_then_linear_95(x, params):
    """params: (w12, tail_slab) in kernel-side layouts (host-prefolded)."""
    w12, tail = params
    b = x.shape[0]
    vmem = pl.BlockSpec(memory_space=pltpu.MemorySpace.VMEM)

    # Advisory cost hint so XLA can schedule around this short custom call.
    flops = 2 * b * (SPATIAL * 26 + 26 * 11 + 11 * 10 + 10 * 10)
    bytes_accessed = 4 * (b * SPATIAL + SPATIAL * 26 + TAIL_ROWS * 128 + b * 10)
    cost = pl.CostEstimate(flops=flops, transcendentals=b * 11,
                           bytes_accessed=bytes_accessed)

    # Total VMEM footprint is ~120 KB -> no custom vmem_limit_bytes needed
    # (fits the scoped default with huge margin on v5e/v6e/v7x).
    return pl.pallas_call(
        _mlp_kernel,
        out_shape=jax.ShapeDtypeStruct((b, 10), jnp.float32),
        in_specs=[vmem, vmem, vmem],
        out_specs=vmem,
        cost_estimate=cost,
    )(x, w12, tail)


def make_params(key):
    ks = jax.random.split(key, 8)
    # PyTorch weight shapes (out, in); kernel uses transposed for x @ W.T == x @ Wt.
    w0 = 0.5 * jax.random.normal(ks[0], (C_OUT,), jnp.float32)       # Conv3d (22,1,1,1,1)
    w1 = 0.02 * jax.random.normal(ks[1], (91, F1_IN), jnp.float32)   # f1
    w2 = 0.1 * jax.random.normal(ks[2], (26, 91), jnp.float32)       # f2
    b2 = 0.1 * jax.random.normal(ks[3], (26,), jnp.float32)
    w3 = 0.2 * jax.random.normal(ks[4], (11, 26), jnp.float32)       # f4
    w4 = 0.2 * jax.random.normal(ks[5], (10, 11), jnp.float32)       # f6
    b4 = 0.1 * jax.random.normal(ks[6], (10,), jnp.float32)
    w5 = 0.3 * jax.random.normal(ks[7], (10, 10), jnp.float32)       # f8

    # Fold the per-channel conv scale into the f1 weight (one-time, host-side):
    # w1t[c, p, j] = w1[j, c*784 + p]  (channel-major, matching NCDHW flatten)
    w1t = w1.T.reshape(C_OUT, SPATIAL, 91)
    w1_eff = jnp.einsum('c,cpj->pj', w0, w1t)            # (784, 91)
    # Fold f2 (no ReLU between f1 and f2):  W12 = W1_eff @ W2.T  -> (784, 26)
    w12 = w1_eff @ w2.T                                  # (784, 26)

    # Pack all tiny tail params into one lane-padded slab -> single DMA.
    tail = jnp.zeros((TAIL_ROWS, 128), jnp.float32)
    tail = tail.at[0:26, 0:11].set(w3.T)
    tail = tail.at[26:37, 0:10].set(w4.T)
    tail = tail.at[37:47, 0:10].set(w5.T)
    tail = tail.at[47, 0:26].set(b2)
    tail = tail.at[48, 0:10].set(b4)

    kernel_params = (w12, tail)
    raw = (w0, w1, w2, b2, w3, w4, b4, w5)
    return kernel_params, raw


def reference(x, raw):
    """Unfused pure-JAX reference matching the PyTorch module exactly."""
    w0, w1, w2, b2, w3, w4, b4, w5 = raw
    xv = x.reshape(x.shape[0], 1, 16, 7, 7)
    conv = xv * w0.reshape(1, C_OUT, 1, 1, 1)            # 1x1x1 conv, in_ch=1, no bias
    h = conv.reshape(x.shape[0], F1_IN)
    h = h @ w1.T
    h = h @ w2.T + b2
    h = jnp.maximum(h, 0.0)
    h = jnp.maximum(h @ w3.T, 0.0)
    h = jnp.maximum(h @ w4.T + b4, 0.0)
    h = h @ w5.T
    return jax.nn.log_softmax(h, axis=1)


if __name__ == "__main__":
    key = jax.random.PRNGKey(0)
    kx, kp = jax.random.split(key)
    x = jax.random.normal(kx, (B, SPATIAL), jnp.float32)
    params, raw = make_params(kp)

    out = conv3d_then_linear_95(x, params)
    out = jax.block_until_ready(out)

    ref = reference(x, raw)
    assert out.shape == (B, 10)
    assert jnp.allclose(out, ref, atol=1e-4, rtol=1e-4), "mismatch vs reference"
    print("KERNEL_OK")
</pallas_src>

<mosaic_0001>
module attributes {stable_mosaic.version = 11 : i64} {
  func.func @_mlp_kernel(%arg0: memref<2x784xf32, #tpu.memory_space<vmem>>, %arg1: memref<784x26xf32, #tpu.memory_space<vmem>>, %arg2: memref<56x128xf32, #tpu.memory_space<vmem>>, %arg3: memref<2x10xf32, #tpu.memory_space<vmem>>) attributes {dimension_semantics = [], scalar_prefetch = 0 : i64, scratch_operands = 0 : i64, tpu.core_type = #tpu.core_type<tc>} {
    %c0 = arith.constant 0 : index
    %c0_0 = arith.constant 0 : index
    %0 = vector.load %arg0[%c0, %c0_0] : memref<2x784xf32, #tpu.memory_space<vmem>>, vector<2x784xf32>
    %c0_1 = arith.constant 0 : index
    %c0_2 = arith.constant 0 : index
    %1 = vector.load %arg2[%c0_1, %c0_2] : memref<56x128xf32, #tpu.memory_space<vmem>>, vector<26x11xf32>
    %c26 = arith.constant 26 : index
    %c0_3 = arith.constant 0 : index
    %2 = vector.load %arg2[%c26, %c0_3] : memref<56x128xf32, #tpu.memory_space<vmem>>, vector<11x10xf32>
    %c37 = arith.constant 37 : index
    %c0_4 = arith.constant 0 : index
    %3 = vector.load %arg2[%c37, %c0_4] : memref<56x128xf32, #tpu.memory_space<vmem>>, vector<10x10xf32>
    %c47 = arith.constant 47 : index
    %c0_5 = arith.constant 0 : index
    %4 = vector.load %arg2[%c47, %c0_5] : memref<56x128xf32, #tpu.memory_space<vmem>>, vector<1x26xf32>
    %c48 = arith.constant 48 : index
    %c0_6 = arith.constant 0 : index
    %5 = vector.load %arg2[%c48, %c0_6] : memref<56x128xf32, #tpu.memory_space<vmem>>, vector<1x10xf32>
    %c0_7 = arith.constant 0 : index
    %c0_8 = arith.constant 0 : index
    %6 = vector.load %arg1[%c0_7, %c0_8] : memref<784x26xf32, #tpu.memory_space<vmem>>, vector<784x26xf32>
    %cst = arith.constant dense<0.000000e+00> : vector<2x26xf32>
    %7 = tpu.matmul %0, %6, %cst {dimension_numbers = #tpu.dot_dimension_numbers<[1], [0], [0], [1], [0, 0, 1, 1], [], []>} : vector<2x784xf32>, vector<784x26xf32>, vector<2x26xf32> -> vector<2x26xf32>
    %8 = vector.broadcast %4 : vector<1x26xf32> to vector<2x26xf32>
    %9 = arith.addf %7, %8 : vector<2x26xf32>
    %cst_9 = arith.constant 0.000000e+00 : f32
    %10 = vector.broadcast %cst_9 : f32 to vector<2x26xf32>
    %11 = arith.maximumf %9, %10 : vector<2x26xf32>
    %cst_10 = arith.constant dense<0.000000e+00> : vector<2x11xf32>
    %12 = tpu.matmul %11, %1, %cst_10 {dimension_numbers = #tpu.dot_dimension_numbers<[1], [0], [0], [1], [0, 0, 1, 1], [], []>} : vector<2x26xf32>, vector<26x11xf32>, vector<2x11xf32> -> vector<2x11xf32>
    %cst_11 = arith.constant 0.000000e+00 : f32
    %13 = vector.broadcast %cst_11 : f32 to vector<2x11xf32>
    %14 = arith.maximumf %12, %13 : vector<2x11xf32>
    %cst_12 = arith.constant dense<0.000000e+00> : vector<2x10xf32>
    %15 = tpu.matmul %14, %2, %cst_12 {dimension_numbers = #tpu.dot_dimension_numbers<[1], [0], [0], [1], [0, 0, 1, 1], [], []>} : vector<2x11xf32>, vector<11x10xf32>, vector<2x10xf32> -> vector<2x10xf32>
    %16 = vector.broadcast %5 : vector<1x10xf32> to vector<2x10xf32>
    %17 = arith.addf %15, %16 : vector<2x10xf32>
    %cst_13 = arith.constant 0.000000e+00 : f32
    %18 = vector.broadcast %cst_13 : f32 to vector<2x10xf32>
    %19 = arith.maximumf %17, %18 : vector<2x10xf32>
    %cst_14 = arith.constant dense<0.000000e+00> : vector<2x10xf32>
    %20 = tpu.matmul %19, %3, %cst_14 {dimension_numbers = #tpu.dot_dimension_numbers<[1], [0], [0], [1], [0, 0, 1, 1], [], []>} : vector<2x10xf32>, vector<10x10xf32>, vector<2x10xf32> -> vector<2x10xf32>
    %cst_15 = arith.constant dense<0xFF800000> : vector<2xf32>
    %21 = vector.multi_reduction <maximumf>, %20, %cst_15 [1] : vector<2x10xf32> to vector<2xf32>
    %22 = vector.shape_cast %21 : vector<2xf32> to vector<2x1xf32>
    %23 = vector.broadcast %22 : vector<2x1xf32> to vector<2x10xf32>
    %24 = arith.subf %20, %23 : vector<2x10xf32>
    %25 = math.exp %24 : vector<2x10xf32>
    %cst_16 = arith.constant dense<0.000000e+00> : vector<2xf32>
    %26 = vector.multi_reduction <add>, %25, %cst_16 [1] : vector<2x10xf32> to vector<2xf32>
    %27 = vector.shape_cast %26 : vector<2xf32> to vector<2x1xf32>
    %28 = math.log %27 : vector<2x1xf32>
    %29 = vector.broadcast %28 : vector<2x1xf32> to vector<2x10xf32>
    %30 = arith.subf %24, %29 : vector<2x10xf32>
    %c0_17 = arith.constant 0 : index
    %c0_18 = arith.constant 0 : index
    %31 = vector.load %arg3[%c0_17, %c0_18] : memref<2x10xf32, #tpu.memory_space<vmem>>, vector<2x10xf32>
    tpu.vector_store %arg3[%c0_17, %c0_18], %30 {strides = array<i32>} : memref<2x10xf32, #tpu.memory_space<vmem>>, vector<2x10xf32>,
    return
  }
}

</mosaic_0001>

<bundles_post_ra>
// kernel: tpu_custom_call.1
= control target key start
LH: loop header
LB: loop body
LE: loop exit
PB: predicated region body
PF: predicated region fallthrough
CT: control target
= control target key end

     0   :  { %v1031_v43 = vmov 1983009808   ;;  %v135_v45 = vlaneseq  ;;  %s1436_s0 = inlined_call_operand.vmem [shape: f32[2,784], index: 0, kind: input, shape index: {}]   ;;  %s1437_s1 = inlined_call_operand.vmem [shape: f32[784,26], index: 1, kind: input, shape index: {}]   ;;  %s1438_s2 = inlined_call_operand.vmem [shape: f32[56,128], index: 2, kind: input, shape index: {}]   ;;  %s1439_s3 = inlined_call_operand.hbm [shape: f32[2,10], index: 3, kind: output, shape index: {}]  }
   0x1   :  { %v43_v0 = vld [vmem:[%s1437_s1 + $0x80] sm:$0xff]  ;;  %v44_v1 = vld [vmem:[%s1437_s1 + $0x88] sm:$0xff]  ;;  %v45_v11 = vld [vmem:[%s1437_s1 + $0x90] sm:$0xff]  ;;  %v133_v44 = vunpack.c.l.s4 %v1031_v43 }
   0x2   :  { %v27_v2 = vld [vmem:[%s1437_s1] sm:$0xff]  ;;  %v881_v3 = vpack.c.bf16 %v44_v1, %v43_v0  ;;  %v28_v4 = vld [vmem:[%s1437_s1 + $0x8] sm:$0xff]  ;;  %v46_v13 = vld [vmem:[%s1437_s1 + $0x98] sm:$0xff]  ;;  %v136_v60 = vshrl.u32 %v135_v45, 7 }
   0x3   :  { %v75_v5 = vld [vmem:[%s1437_s1 + $0x180] sm:$0xff]  ;;  %v76_v6 = vld [vmem:[%s1437_s1 + $0x188] sm:$0xff]  ;;  %v883_v7 = vpack.c.bf16 %v28_v4, %v27_v2  ;;  %v29_v14 = vld [vmem:[%s1437_s1 + $0x10] sm:$0xff]  ;;  %v885_v16 = vpack.c.bf16 %v46_v13, %v45_v11  ;;  %v134_v59 = vunpack.c.0.s8 %v133_v44 }
   0x4   :  { %v913_v8 = vpack.c.bf16 %v76_v6, %v75_v5  ;;  %v59_v9 = vld [vmem:[%s1437_s1 + $0x100] sm:$0xff]  ;;  %v60_v10 = vld [vmem:[%s1437_s1 + $0x108] sm:$0xff]  ;;  %882 = vmatprep.subr.bf16.mxu0 %v881_v3  ;;  %v30_v15 = vld [vmem:[%s1437_s1 + $0x18] sm:$0xff] }
   0x5   :  { %v915_v12 = vpack.c.bf16 %v60_v10, %v59_v9  ;;  %884 = vmatpush3.bf16.msra.mxu0 %v883_v7  ;;  %v887_v17 = vpack.c.bf16 %v30_v15, %v29_v14  ;;  %v77_v18 = vld [vmem:[%s1437_s1 + $0x190] sm:$0xff]  ;;  %v78_v19 = vld [vmem:[%s1437_s1 + $0x198] sm:$0xff]  ;;  %v47_v23 = vld [vmem:[%s1437_s1 + $0xa0] sm:$0xff]  ;;  %v1201_v10 = vsub.s32 %v134_v59, %v136_v60 }
   0x6   :  { %914 = vmatprep.subr.bf16.mxu1 %v913_v8  ;;  %v61_v20 = vld [vmem:[%s1437_s1 + $0x110] sm:$0xff]  ;;  %v917_v21 = vpack.c.bf16 %v78_v19, %v77_v18  ;;  %v62_v22 = vld [vmem:[%s1437_s1 + $0x118] sm:$0xff]  ;;  %v48_v24 = vld [vmem:[%s1437_s1 + $0xa8] sm:$0xff]  ;;  %886 = vmatprep.subr.bf16.mxu0 %v885_v16 }
   0x7   :  { %916 = vmatpush3.bf16.msra.mxu1 %v915_v12  ;;  %v919_v25 = vpack.c.bf16 %v62_v22, %v61_v20  ;;  %v889_v26 = vpack.c.bf16 %v48_v24, %v47_v23  ;;  %v31_v27 = vld [vmem:[%s1437_s1 + $0x20] sm:$0xff]  ;;  %v32_v28 = vld [vmem:[%s1437_s1 + $0x28] sm:$0xff]  ;;  %v49_v35 = vld [vmem:[%s1437_s1 + $0xb0] sm:$0xff] }
   0x8   :  { %v79_v29 = vld [vmem:[%s1437_s1 + $0x1a0] sm:$0xff]  ;;  %918 = vmatprep.subr.bf16.mxu1 %v917_v21  ;;  %v80_v30 = vld [vmem:[%s1437_s1 + $0x1a8] sm:$0xff]  ;;  %v891_v33 = vpack.c.bf16 %v32_v28, %v31_v27  ;;  %v50_v36 = vld [vmem:[%s1437_s1 + $0xb8] sm:$0xff] }
   0x9   :  { %v63_v31 = vld [vmem:[%s1437_s1 + $0x120] sm:$0xff]  ;;  %v64_v32 = vld [vmem:[%s1437_s1 + $0x128] sm:$0xff]  ;;  %888 = vmatpush3.bf16.msra.mxu0 %v887_v17  ;;  %v921_v34 = vpack.c.bf16 %v80_v30, %v79_v29  ;;  %v33_v37 = vld [vmem:[%s1437_s1 + $0x30] sm:$0xff]  ;;  %v893_v39 = vpack.c.bf16 %v50_v36, %v49_v35 }
   0xa   :  { %890 = vmatprep.subr.bf16.mxu0 %v889_v26  ;;  %v923_v38 = vpack.c.bf16 %v64_v32, %v63_v31  ;;  %v34_v40 = vld [vmem:[%s1437_s1 + $0x38] sm:$0xff]  ;;  %v81_v41 = vld [vmem:[%s1437_s1 + $0x1b0] sm:$0xff]  ;;  %v51_v49 = vld [vmem:[%s1437_s1 + $0xc0] sm:$0xff] }
   0xb   :  { %920 = vmatpush3.bf16.msra.mxu1 %v919_v25  ;;  %v82_v42 = vld [vmem:[%s1437_s1 + $0x1b8] sm:$0xff]  ;;  %v65_v47 = vld [vmem:[%s1437_s1 + $0x130] sm:$0xff]  ;;  %v52_v50 = vld [vmem:[%s1437_s1 + $0xc8] sm:$0xff]  ;;  %v895_v51 = vpack.c.bf16 %v34_v40, %v33_v37 }
   0xc   :  { %922 = vmatprep.subr.bf16.mxu1 %v921_v34  ;;  %v925_v46 = vpack.c.bf16 %v82_v42, %v81_v41  ;;  %v66_v48 = vld [vmem:[%s1437_s1 + $0x138] sm:$0xff]  ;;  %v83_v52 = vld [vmem:[%s1437_s1 + $0x1c0] sm:$0xff]  ;;  %v84_v53 = vld [vmem:[%s1437_s1 + $0x1c8] sm:$0xff]  ;;  %v897_v55 = vpack.c.bf16 %v52_v50, %v51_v49 }
   0xd   :  { %892 = vmatpush3.bf16.msra.mxu0 %v891_v33  ;;  %v927_v54 = vpack.c.bf16 %v66_v48, %v65_v47  ;;  %v35_v56 = vld [vmem:[%s1437_s1 + $0x40] sm:$0xff]  ;;  %v36_v57 = vld [vmem:[%s1437_s1 + $0x48] sm:$0xff]  ;;  %v929_v61 = vpack.c.bf16 %v84_v53, %v83_v52  ;;  %v53_v63 = vld [vmem:[%s1437_s1 + $0xd0] sm:$0xff] }
   0xe   :  { %894 = vmatprep.subr.bf16.mxu0 %v893_v39  ;;  %v67_v58 = vld [vmem:[%s1437_s1 + $0x140] sm:$0xff]  ;;  %v68_v62 = vld [vmem:[%s1437_s1 + $0x148] sm:$0xff]  ;;  %v54_v0 = vld [vmem:[%s1437_s1 + $0xd8] sm:$0xff]  ;;  %v899_v3 = vpack.c.bf16 %v36_v57, %v35_v56 }
   0xf   :  { %924 = vmatpush3.bf16.msra.mxu1 %v923_v38  ;;  %v85_v1 = vld [vmem:[%s1437_s1 + $0x1d0] sm:$0xff]  ;;  %v86_v2 = vld [vmem:[%s1437_s1 + $0x1d8] sm:$0xff]  ;;  %v931_v5 = vpack.c.bf16 %v68_v62, %v67_v58  ;;  %v901_v6 = vpack.c.bf16 %v54_v0, %v53_v63  ;;  %v55_v12 = vld [vmem:[%s1437_s1 + $0xe0] sm:$0xff] }
  0x10   :  { %926 = vmatprep.subr.bf16.mxu1 %v925_v46  ;;  %v37_v4 = vld [vmem:[%s1437_s1 + $0x50] sm:$0xff]  ;;  %v38_v7 = vld [vmem:[%s1437_s1 + $0x58] sm:$0xff]  ;;  %v933_v11 = vpack.c.bf16 %v86_v2, %v85_v1  ;;  %v56_v13 = vld [vmem:[%s1437_s1 + $0xe8] sm:$0xff] }
  0x11   :  { %896 = vmatpush3.bf16.msra.mxu0 %v895_v51  ;;  %v69_v8 = vld [vmem:[%s1437_s1 + $0x150] sm:$0xff]  ;;  %v70_v9 = vld [vmem:[%s1437_s1 + $0x158] sm:$0xff]  ;;  %v87_v14 = vld [vmem:[%s1437_s1 + $0x1e0] sm:$0xff]  ;;  %v903_v16 = vpack.c.bf16 %v38_v7, %v37_v4  ;;  %v905_v19 = vpack.c.bf16 %v56_v13, %v55_v12 }
  0x12   :  { %898 = vmatprep.subr.bf16.mxu0 %v897_v55  ;;  %v88_v15 = vld [vmem:[%s1437_s1 + $0x1e8] sm:$0xff]  ;;  %v935_v17 = vpack.c.bf16 %v70_v9, %v69_v8  ;;  %v15_v18 = vld [vmem:[%s1436_s0] sm:$0xff]  ;;  %v57_v27 = vld [vmem:[%s1437_s1 + $0xf0] sm:$0xff] }
  0x13   :  { %928 = vmatpush3.bf16.msra.mxu1 %v927_v54  ;;  %v39_v20 = vld [vmem:[%s1437_s1 + $0x60] sm:$0xff]  ;;  %v40_v21 = vld [vmem:[%s1437_s1 + $0x68] sm:$0xff]  ;;  %v138_v23 = vrot.slane %v15_v18, %v1201_v10  ;;  %v131_v24 = vcombine.high %v15_v18, %v15_v18  ;;  %v937_v25 = vpack.c.bf16 %v88_v15, %v87_v14  ;;  %v58_v28 = vld [vmem:[%s1437_s1 + $0xf8] sm:$0xff] }
  0x14   :  { %930 = vmatprep.subr.bf16.mxu1 %v929_v61  ;;  %v71_v22 = vld [vmem:[%s1437_s1 + $0x160] sm:$0xff]  ;;  %v72_v26 = vld [vmem:[%s1437_s1 + $0x168] sm:$0xff]  ;;  %v89_v29 = vld [vmem:[%s1437_s1 + $0x1f0] sm:$0xff]  ;;  %v907_v33 = vpack.c.bf16 %v40_v21, %v39_v20  ;;  %v909_v35 = vpack.c.bf16 %v58_v28, %v57_v27 }
  0x15   :  { %900 = vmatpush3.bf16.msra.mxu0 %v899_v3  ;;  %v90_v30 = vld [vmem:[%s1437_s1 + $0x1f8] sm:$0xff]  ;;  %v146_v31 = vcombine.high %v138_v23, %v138_v23  ;;  %v145_v32 = vrot.slane %v131_v24, %v1201_v10  ;;  %v939_v34 = vpack.c.bf16 %v72_v26, %v71_v22  ;;  %v41_v36 = vld [vmem:[%s1437_s1 + $0x70] sm:$0xff]  ;;  %v107_v42 = vld [vmem:[%s1437_s1 + $0x280] sm:$0xff] }
  0x16   :  { %902 = vmatprep.subr.bf16.mxu0 %v901_v6  ;;  %v42_v37 = vld [vmem:[%s1437_s1 + $0x78] sm:$0xff]  ;;  %v73_v38 = vld [vmem:[%s1437_s1 + $0x170] sm:$0xff]  ;;  %v941_v40 = vpack.c.bf16 %v90_v30, %v89_v29  ;;  %v108_v43 = vld [vmem:[%s1437_s1 + $0x288] sm:$0xff] }
  0x17   :  { %932 = vmatpush3.bf16.msra.mxu1 %v931_v5  ;;  %v147_v39 = vcombine.high %v145_v32, %v145_v32  ;;  %237 = vmatprep.mubr.f32.mxu0 %v146_v31  ;;  %v74_v41 = vld [vmem:[%s1437_s1 + $0x178] sm:$0xff]  ;;  %v911_v44 = vpack.c.bf16 %v42_v37, %v41_v36  ;;  %v945_v46 = vpack.c.bf16 %v108_v43, %v107_v42  ;;  %v91_v47 = vld [vmem:[%s1437_s1 + $0x200] sm:$0xff]  ;;  %v92_v48 = vld [vmem:[%s1437_s1 + $0x208] sm:$0xff] }
  0x18   :  { %934 = vmatprep.subr.bf16.mxu1 %v933_v11  ;;  %v943_v45 = vpack.c.bf16 %v74_v41, %v73_v38  ;;  %v109_v49 = vld [vmem:[%s1437_s1 + $0x290] sm:$0xff]  ;;  %v110_v50 = vld [vmem:[%s1437_s1 + $0x298] sm:$0xff]  ;;  %v947_v51 = vpack.c.bf16 %v92_v48, %v91_v47  ;;  %v16_v53 = vld [vmem:[%s1436_s0 + $0x8] sm:$0x3f] }
  0x19   :  { %904 = vmatpush3.bf16.msra.mxu0 %v903_v16  ;;  %307 = vmatprep.mubr.f32.mxu1 %v147_v39  ;;  %v93_v52 = vld [vmem:[%s1437_s1 + $0x210] sm:$0xff]  ;;  %v123_v54 = vld [vmem:[%s1437_s1 + $0x300] sm:$0xff]  ;;  %v949_v55 = vpack.c.bf16 %v110_v50, %v109_v49  ;;  %v94_v56 = vld [vmem:[%s1437_s1 + $0x218] sm:$0xff]  ;;  %v148_v57 = vcombine.high %v16_v53, %v16_v53  ;;  %v1287_v58 = vrot.slane %v16_v53, %v1201_v10 }
  0x1a   :  { %906 = vmatprep.subr.bf16.mxu0 %v905_v19  ;;  %v124_v59 = vld [vmem:[%s1437_s1 + $0x308] sm:$0xff] }
  0x1b   :  { %936 = vmatpush3.bf16.msra.mxu1 %v935_v17 }
  0x1c   :  { %938 = vmatprep.subr.bf16.mxu1 %v937_v25 }
  0x1d   :  { %908 = vmatpush3.bf16.msra.mxu0 %v907_v33 }
  0x1e   :  { %910 = vmatprep.subr.bf16.mxu0 %v909_v35 }
  0x1f   :  { %940 = vmatpush3.bf16.msra.mxu1 %v939_v34 }
  0x20   :  { %942 = vmatprep.subr.bf16.mxu1 %v941_v40 }
  0x21   :  { %912 = vmatpush3.bf16.msra.mxu0 %v911_v44 }
  0x22   :  { %946 = vmatprep.subr.bf16.mxu0 %v945_v46 }
  0x23   :  { %944 = vmatpush3.bf16.msra.mxu1 %v943_v45 }
  0x24   :  { %8 = vsyncpa [#allocation3], 0  ;;  %v111_v60 = vld [vmem:[%s1437_s1 + $0x2a0] sm:$0xff]  ;;  %v112_v61 = vld [vmem:[%s1437_s1 + $0x2a8] sm:$0xff]  ;;  %v1032_v62 = vmov 0.0|0.0   ;;  %v978_v63 = vpack.c.bf16 %v124_v59, %v123_v54  ;;  %238 = vmatmul.mubr.f32.vlgmr.msra.gmra.mrb[0].mxu0 %v138_v23  ;;  %v163_v0 = vcombine.high %v1287_v58, %v1287_v58  ;;  %v951_v1 = vpack.c.bf16 %v94_v56, %v93_v52 }
  0x25   :  { %977 = vmatprep.subr.bf16.mxu1 %v1032_v62  ;;  %948 = vmatpush3.bf16.msra.mxu0 %v947_v51  ;;  %v953_v2 = vpack.c.bf16 %v112_v61, %v111_v60  ;;  %v95_v3 = vld [vmem:[%s1437_s1 + $0x220] sm:$0xff]  ;;  %v96_v4 = vld [vmem:[%s1437_s1 + $0x228] sm:$0xff]  ;;  %v162_v5 = vrot.slane %v148_v57, %v1201_v10  ;;  %v113_v6 = vld [vmem:[%s1437_s1 + $0x2b0] sm:$0xff]  ;;  %vm1033_vm0 = vmmov 0   ;;  %v1034_v8 = vmov 0.0  }
  0x26   :  { %308 = vmatmul.mubr.f32.vlgmr.msra.gmra.mrb[0].mxu1 %v145_v32  ;;  %950 = vmatprep.subr.bf16.mxu0 %v949_v55  ;;  %v114_v7 = vld [vmem:[%s1437_s1 + $0x2b8] sm:$0xff]  ;;  %vm170_vm1 = vcmask 130048   ;;  %v955_v9 = vpack.c.bf16 %v96_v4, %v95_v3  ;;  %v97_v11 = vld [vmem:[%s1437_s1 + $0x230] sm:$0xff]  ;;  %v115_v13 = vld [vmem:[%s1437_s1 + $0x2c0] sm:$0xff]  ;;  %vm458_vm2 = vcmask 1041408   ;;  %vm1035_vm3 = vmmov 1  }
  0x27   :  { %377 = vmatprep.mubr.f32.mxu0 %v163_v0  ;;  %979 = vmatpush3.bf16.msra.mxu1 %v978_v63  ;;  %v957_v10 = vpack.c.bf16 %v114_v7, %v113_v6  ;;  %v98_v12 = vld [vmem:[%s1437_s1 + $0x238] sm:$0xff]  ;;  %v116_v14 = vld [vmem:[%s1437_s1 + $0x2c8] sm:$0xff]  ;;  %v99_v17 = vld [vmem:[%s1437_s1 + $0x240] sm:$0xff]  ;;  %vm541_vm5 = vcmask 1042432   ;;  %vm454_vm6 = vcmask 211968   ;;  %vm537_vm8 = vcmask 89088  }
  0x28   :  { %853 = vmatprep.mubr.msk.f32.mxu1 %vm1033_vm0, %v1034_v8  ;;  %980 = vmatprep.subr.bf16.mxu1 %v1032_v62  ;;  %v959_v15 = vpack.c.bf16 %v98_v12, %v97_v11  ;;  %v961_v16 = vpack.c.bf16 %v116_v14, %v115_v13  ;;  %v100_v18 = vld [vmem:[%s1437_s1 + $0x248] sm:$0xff]  ;;  %v117_v19 = vld [vmem:[%s1437_s1 + $0x2d0] sm:$0xff]  ;;  %v118_v20 = vld [vmem:[%s1437_s1 + $0x2d8] sm:$0xff]  ;;  %vm616_vm9 = vcmask 80896   ;;  %vm693_vm10 = vcmask 74752  }
  0x29   :  { %952 = vmatpush3.bf16.msra.mxu0 %v951_v1  ;;  %v963_v21 = vpack.c.bf16 %v100_v18, %v99_v17  ;;  %v965_v22 = vpack.c.bf16 %v118_v20, %v117_v19  ;;  %v101_v23 = vld [vmem:[%s1437_s1 + $0x250] sm:$0xff]  ;;  %v102_v24 = vld [vmem:[%s1437_s1 + $0x258] sm:$0xff]  ;;  %v119_v25 = vld [vmem:[%s1437_s1 + $0x2e0] sm:$0xff] }
  0x2a   :  { %954 = vmatprep.subr.bf16.mxu0 %v953_v2  ;;  %854 = vmatmul.mubr.msk.f32.vlgmr.msra.gmra.mrb[2].mxu1 %vm170_vm1, %v162_v5  ;;  %v120_v26 = vld [vmem:[%s1437_s1 + $0x2e8] sm:$0xff]  ;;  %v967_v27 = vpack.c.bf16 %v102_v24, %v101_v23  ;;  %v103_v29 = vld [vmem:[%s1437_s1 + $0x260] sm:$0xff]  ;;  %v121_v31 = vld [vmem:[%s1437_s1 + $0x2f0] sm:$0xff] }
  0x2b   :  { %864 = vmatprep.mubr.msk.f32.mxu1 %vm1033_vm0, %v1034_v8  ;;  %v969_v28 = vpack.c.bf16 %v120_v26, %v119_v25  ;;  %v104_v30 = vld [vmem:[%s1437_s1 + $0x268] sm:$0xff]  ;;  %v122_v32 = vld [vmem:[%s1437_s1 + $0x2f8] sm:$0xff]  ;;  %v105_v35 = vld [vmem:[%s1437_s1 + $0x270] sm:$0xff] }
  0x2c   :  { %v971_v33 = vpack.c.bf16 %v104_v30, %v103_v29  ;;  %v973_v34 = vpack.c.bf16 %v122_v32, %v121_v31  ;;  %v106_v36 = vld [vmem:[%s1437_s1 + $0x278] sm:$0xff]  ;;  %v17_v38 = vld [vmem:[%s1438_s2] sm:$0xff]  ;;  %v18_v39 = vld [vmem:[%s1438_s2 + $0x8] sm:$0xff] }
  0x2d   :  { %956 = vmatpush3.bf16.msra.mxu0 %v955_v9  ;;  %v975_v37 = vpack.c.bf16 %v106_v36, %v105_v35  ;;  %v981_v40 = vpack.c.bf16 %v18_v39, %v17_v38  ;;  %v19_v41 = vld [vmem:[%s1438_s2 + $0x10] sm:$0xff]  ;;  %v20_v42 = vld [vmem:[%s1438_s2 + $0x18] sm:$0x3]  ;;  %vm1388_vm4 = vmpackc.low %vm458_vm2, %vm1035_vm3 }
  0x2e   :  { %958 = vmatprep.subr.bf16.mxu0 %v957_v10  ;;  %v984_v43 = vpack.c.bf16 %v20_v42, %v19_v41  ;;  %v721_v46 = vld [vmem:[%s1438_s2 + $0x2f] ss:$0 sm:$0xff]  ;;  %v21_v60 = vld [vmem:[%s1438_s2 + $0x1a] sm:$0xff]  ;;  %v22_v61 = vld [vmem:[%s1438_s2 + $0x22] sm:$0x7] }
  0x2f   :  { %982 = vmatpush3.bf16.msra.mxu1 %v981_v40  ;;  %v988_v0 = vpack.c.bf16 %v22_v61, %v21_v60  ;;  %vm989_vm7 = vmpackc.low %vm541_vm5, %vm1035_vm3  ;;  %v23_v5 = vld [vmem:[%s1438_s2 + $0x25] sm:$0xff]  ;;  %v24_v6 = vld [vmem:[%s1438_s2 + $0x2d] sm:$0x3] }
  0x30   :  { %983 = vmatprep.subr.bf16.mxu1 %v1032_v62  ;;  %v992_v7 = vpack.c.bf16 %v24_v6, %v23_v5 }
  0x31   :  { %960 = vmatpush3.bf16.msra.mxu0 %v959_v15 }
  0x32   :  { %962 = vmatprep.subr.bf16.mxu0 %v961_v16 }
  0x33   :  { %986 = vmatpush3.bf16.msk.msra.mxu1 %vm1388_vm4, %v984_v43 }
  0x34   :  { %987 = vmatprep.subr.bf16.mxu1 %v1032_v62 }
  0x35   :  { %964 = vmatpush3.bf16.msra.mxu0 %v963_v21 }
  0x36   :  { %966 = vmatprep.subr.bf16.mxu0 %v965_v22 }
  0x39   :  { %968 = vmatpush3.bf16.msra.mxu0 %v967_v27 }
  0x3a   :  { %970 = vmatprep.subr.bf16.mxu0 %v969_v28 }
  0x3d   :  { %972 = vmatpush3.bf16.msra.mxu0 %v971_v33 }
  0x3e   :  { %974 = vmatprep.subr.bf16.mxu0 %v973_v34 }
  0x41   :  { %976 = vmatpush3.bf16.msra.mxu0 %v975_v37 }
  0x44   :  { %378 = vmatmul.mubr.f32.vlgmr.msra.gmra.mrb[2].mxu0 %v1287_v58 }
  0xf7   :  { %v762_v45 = vpop.f32.mrb[0].mxu0 }
  0xf8   :  { %v763_v47 = vpop.f32.mrb[1].mxu0 }
  0xf9   :  { %v797_v48 = vpop.f32.mrb[0].mxu1  ;;  %v764_v49 = vadd.f32 %v763_v47, %v762_v45 }
  0xfa   :  { %v798_v50 = vpop.f32.mrb[1].mxu1 }
  0xfb   :  { %v799_v51 = vadd.f32 %v798_v50, %v797_v48  ;;  %v240_v52 = vadd.f32 %v764_v49, %v721_v46 }
  0xfd   :  { %v310_v53 = vadd.f32 %v799_v51, %v240_v52  ;;  %v449_v54 = vpop.f32.mrb[2].mxu1 }
  0xfe   :  { %v855_v55 = vpop.f32.mrb[3].mxu1 }
 0x117   :  { %v832_v56 = vpop.f32.mrb[2].mxu0 }
 0x118   :  { %v833_v57 = vpop.f32.mrb[3].mxu0 }
 0x119   :  { %v834_v58 = vadd.f32 %v833_v57, %v832_v56 }
 0x11b   :  { %v380_v59 = vadd.f32 %v834_v58, %v310_v53 }
 0x11d   :  { %v450_v63 = vadd.f32 %v449_v54, %v380_v59 }
 0x11f   :  { %v453_v1 = vmax.f32 %v450_v63, 0.0 }
 0x121   :  { %865 = vmatmul.mubr.msk.f32.vlgmr.msra.gmra.mrb[4].mxu1 %vm454_vm6, %v453_v1 }
 0x122   :  { %990 = vmatpush3.bf16.msk.msra.mxu1 %vm989_vm7, %v988_v0  ;;  %871 = vmatprep.mubr.msk.f32.mxu1 %vm1033_vm0, %v1034_v8 }
 0x123   :  { %991 = vmatprep.subr.bf16.mxu1 %v1032_v62  ;;  %v725_v62 = vld [vmem:[%s1438_s2 + $0x30] ss:$0 sm:$0xff]  ;;  %s1036_s2 = smov [#allocation2]  }
 0x124   :  { %s713_s12 = sshll.u32 %s1036_s2, 4  ;;  %s714_s12 = int_to_ptr.vmem [resolvable:$true] %s713_s12 }
 0x125   :  { %s1007_s13 = scalar_lea.vmem %s714_s12, 32  ;;  %p1012_p1 = scmp.lt.s32.totalorder %s714_s12, %s714_s12 }
 0x126   :  { %p1008_p0 = scmp.ne.s32.totalorder %s714_s12, %s1007_s13  ;;  %p1013_p2 = scmp.lt.s32.totalorder %s1007_s13, %s1007_s13 }
 0x128   :  { %p1014_p3 = por %p1013_p2, %p1012_p1 }
 0x12a   :  { %p1015_p4 = pnand %p1014_p3, %p1008_p0 }
 0x1f4   :  { %v528_v2 = vpop.f32.mrb[4].mxu1 }
 0x1f5   :  { %v532_v3 = vmax.f32 %v528_v2, 0.0  ;;  %v866_v4 = vpop.f32.mrb[5].mxu1 }
 0x1f7   :  { %872 = vmatmul.mubr.msk.f32.vlgmr.msra.gmra.mrb[6].mxu1 %vm537_vm8, %v532_v3 }
 0x1f8   :  { %878 = vmatprep.mubr.msk.f32.mxu1 %vm1033_vm0, %v1034_v8  ;;  %994 = vmatpush3.bf16.msk.msra.mxu1 %vm1388_vm4, %v992_v7 }
 0x2ca   :  { %v611_v9 = vpop.f32.mrb[6].mxu1 }
 0x2cb   :  { %v612_v10 = vadd.f32 %v725_v62, %v611_v9  ;;  %v873_v11 = vpop.f32.mrb[7].mxu1 }
 0x2cd   :  { %v615_v8 = vmax.f32 %v612_v10, 0.0 }
 0x2cf   :  { %879 = vmatmul.mubr.msk.f32.vlgmr.msra.gmra.mrb[8].mxu1 %vm616_vm9, %v615_v8 }
 0x3a2   :  { %v689_v12 = vpop.f32.mrb[8].mxu1 }
 0x3a3   :  { %v880_v13 = vpop.f32.mrb[9].mxu1  ;;  %v694_v14 = vsel %vm693_vm10, %v689_v12, -inf }
 0x3a4   :  { %695 = vmax.xlane.f32.xlu0 %v694_v14 }
 0x431   :  { %v696_v15 = vpop.xlane.xlu0 %695 }
 0x432   :  { %v697_v16 = vsub.f32 %v689_v12, %v696_v15 }
 0x434   :  { %v698_v17 = vmul.f32 1.442695, %v697_v16 }
 0x436   :  { %1003 = vpow2.f32 %v698_v17 }
 0x440   :  { %v1004_v18 = vpop.eup %1003 }
 0x441   :  { %v700_v19 = vsel %vm693_vm10, %v1004_v18, 0.0 }
 0x442   :  { %701 = vadd.xlane.f32.xlu0 %v700_v19 }
 0x4cf   :  { %v702_v20 = vpop.xlane.xlu0 %701 }
 0x4d0   :  { %1005 = vlog2.f32 %v702_v20 }
 0x4da   :  { %v1006_v21 = vpop.eup %1005 }
 0x4db   :  { %v704_v22 = vmul.f32 0.6931472, %v1006_v21 }
 0x4dd   :  { %v705_v23 = vsub.f32 %v697_v16, %v704_v22 }
 0x4df   :  { %706 = vst.msk [vmem:[#allocation2] sm:$0x3] %vm693_vm10, %v705_v23 }
 0x4e0   :  { %1018 = shalt.err (!%p1015_p4)
}
 0x4e1   :  { %s1019_s16 = scalar_lea.hbm %s1439_s3, 32 }
 0x4e2   :  { %p1020_p5 = scmp.ne.s32.totalorder %s1439_s3, %s1019_s16  ;;  %p1023_p6 = scmp.lt.u32.totalorder %s1019_s16, %s1439_s3 }
 0x4e4   :  { %p1025_p7 = pnand %p1023_p6, %p1020_p5 }
 0x4e6   :  { %1028 = shalt.err (!%p1025_p7)
}
 0x4e7   :  { %716 = dma.vmem_to_hbm [thread:$0]  %s714_s12, 32, %s1439_s3, [#allocation3]  }
 0x4e8   :  { %1029 = dma.done.wait [#allocation3], 32  }
 0x4e9   :  { %1030 = vsyncadd [#allocation3], 4294967264 }
 0x4ea   :  { %720 = vsyncpa [#allocation3], 1 }

</bundles_post_ra>
